<compile_context>
chip_gen: v5e
topology: v5e:2x2
jax: 0.10.0
libtpu: 0.0.40
codegen_flags: <defaults>
</compile_context>

<pallas_src>
import numpy as np
import jax
import jax.numpy as jnp
from jax.experimental import pallas as pl
from jax.experimental.pallas import tpu as pltpu


def _round_up(x, m):
    return ((x + m - 1) // m) * m


# ----------------------------------------------------------------------------
# Pallas kernel: one grid step == one (j_basis, j_cg) pair.
#   w_ref       : (1, Kpad)        w^T, zero-padded
#   block_t_ref : (Kpad, Kpad)     psi_ft_block^T, zero-padded
#   cb_t_ref    : (Kpad, Mpad)     change_basis^T, zero-padded (Mpad multiple of 128)
#   out_ref     : (1, Mpad)        row m = (change_basis @ psi_ft_block @ w)[m]
# ----------------------------------------------------------------------------
def _irreps_map_batched_kernel(w_ref, block_t_ref, cb_t_ref, out_ref):
    # v^T = w^T @ psi_ft_block^T            (1, Kpad)  -- right-associated
    v_row = jnp.dot(w_ref[...], block_t_ref[...], preferred_element_type=jnp.float32)
    # c^T = v^T @ change_basis^T            (1, Mpad)  -- lane-dense, unmasked store
    out_ref[...] = jnp.dot(v_row, cb_t_ref[...], preferred_element_type=jnp.float32)


def irreps_map_fourier_bl_batched(w_packed, block_t_packed, cb_t_packed):
    """One pallas_call covering all irrep pairs.

    w_packed       : (P, 1, Kpad)    fixed buffers (packed once at init)
    block_t_packed : (P, Kpad, Kpad) parameter-derived (repacked on param update)
    cb_t_packed    : (P, Kpad, Mpad) fixed buffers (packed once at init)
    returns        : (P, 1, Mpad)    padded rows; pair i's real data is [:M_i]
    """
    P, _, Kpad = w_packed.shape
    Mpad = cb_t_packed.shape[-1]

    flops = 2 * P * (Kpad * Kpad + Kpad * Mpad)
    bytes_accessed = 4 * P * (Kpad + Kpad * Kpad + Kpad * Mpad + Mpad)

    return pl.pallas_call(
        _irreps_map_batched_kernel,
        grid=(P,),
        in_specs=[
            pl.BlockSpec((None, 1, Kpad), lambda p: (p, 0, 0)),
            pl.BlockSpec((None, Kpad, Kpad), lambda p: (p, 0, 0)),
            pl.BlockSpec((None, Kpad, Mpad), lambda p: (p, 0, 0)),
        ],
        out_specs=pl.BlockSpec((None, 1, Mpad), lambda p: (p, 0, 0)),
        out_shape=jax.ShapeDtypeStruct((P, 1, Mpad), jnp.float32),
        compiler_params=pltpu.CompilerParams(
            # pair axis shards across v7x's 2 TensorCores; harmless on v5e/v6e
            dimension_semantics=("parallel",),
            # tiles are tiny (Kpad*Mpad*4 ≈ 16 KiB); explicit limit keeps us well
            # inside v7x's 64 MiB physical / 32 MiB default scoped VMEM
            vmem_limit_bytes=32 * 1024 * 1024,
        ),
        cost_estimate=pl.CostEstimate(
            flops=flops, transcendentals=0, bytes_accessed=bytes_accessed
        ),
    )(w_packed, block_t_packed, cb_t_packed)


# ----------------------------------------------------------------------------
# Host-side packing ("module init" / "param update" work, NOT per forward).
# ----------------------------------------------------------------------------
def pack_fixed_buffers(active_pairs):
    """Pack change_basis^T and w (registered buffers). Done once at module init."""
    Ks = [p["K"] for p in active_pairs]
    Ms = [p["size_b"] * p["size_c"] for p in active_pairs]
    Kpad = max(8, _round_up(max(Ks), 8))       # sublane multiple
    Mpad = max(128, _round_up(max(Ms), 128))   # lane multiple -> unmasked stores
    P = len(active_pairs)

    cb_t = np.zeros((P, Kpad, Mpad), np.float32)
    w_pk = np.zeros((P, 1, Kpad), np.float32)
    for i, p in enumerate(active_pairs):
        K = p["K"]
        M = p["size_b"] * p["size_c"]
        cb_t[i, :K, :M] = np.asarray(p["change_basis"]).T
        w_pk[i, 0, :K] = np.asarray(p["w"])
    return jnp.asarray(w_pk), jnp.asarray(cb_t), Kpad, Mpad


def pack_psi_ft_blocks(active_pairs, Kpad):
    """Pack psi_ft_block^T per pair.

    TODO(synk): in the real module this depends on the `fts` Parameters and
    should be refreshed only when the optimizer updates them, not per forward.
    """
    P = len(active_pairs)
    bt = np.zeros((P, Kpad, Kpad), np.float32)
    for i, p in enumerate(active_pairs):
        K = p["K"]
        bt[i, :K, :K] = np.asarray(p["psi_ft_block"]).T
    return jnp.asarray(bt)


# ----------------------------------------------------------------------------
# Glue: synthetic SO(3)-like pair construction (irreps labelled by l, size 2l+1),
# replacing escnn's irrep / Clebsch-Gordan machinery.
# ----------------------------------------------------------------------------
def _so3_tensor_product_irreps(l1, l2):
    return list(range(abs(l1 - l2), l1 + l2 + 1))


def build_pair(l_basis, l_cg, L, key):
    size_b = 2 * l_basis + 1
    size_c = 2 * l_cg + 1
    d_tp = size_b * size_c
    tp_ls = _so3_tensor_product_irreps(l_basis, l_cg)

    k_cb, k_ft = jax.random.split(key)
    # Deterministic orthogonal stand-in for the tensor-product change of basis.
    q, _ = jnp.linalg.qr(jax.random.normal(k_cb, (d_tp, d_tp), dtype=jnp.float32))
    change_basis_full = q
    change_basis_inv_full = q.T

    # get_bandlimited_tp: keep tensor-product irreps with frequency <= L.
    psi_inds = [l <= L for l in tp_ls]
    sizes = [2 * l + 1 for l in tp_ls]
    mask = np.concatenate([np.full(s, pi, dtype=bool) for pi, s in zip(psi_inds, sizes)])
    if not mask.any():
        return None  # empty tensor-product branch: c_jj = zeros(1, size_b, size_c)
    keep = np.nonzero(mask)[0]
    kept_ls = [l for l, pi in zip(tp_ls, psi_inds) if pi]

    change_basis = change_basis_full[:, keep]        # (d_b*d_cg, K)
    change_basis_inv = change_basis_inv_full[keep]   # (K, d_b*d_cg)

    # get_vars: w buffer.
    if l_basis == l_cg:
        w = change_basis_inv @ jnp.eye(size_b, dtype=jnp.float32).flatten()
    else:
        w = jnp.ones((d_tp,), dtype=jnp.float32)[keep]

    # get_fourier_transforms: per-irrep (d, d) learnable parameters. The module
    # initializes these to ones (trivial irrep) / zeros; here we use deterministic
    # non-trivial values (valid trained state) so the kernel does real work.
    fts = []
    for l in kept_ls:
        d = 2 * l + 1
        k_ft, sub = jax.random.split(k_ft)
        fts.append(0.1 * jax.random.normal(sub, (d, d), dtype=jnp.float32))
    psi_ft_block = jax.scipy.linalg.block_diag(*fts)  # (K, K)

    return dict(
        change_basis=change_basis,
        psi_ft_block=psi_ft_block,
        w=w,
        size_b=size_b,
        size_c=size_c,
        K=int(change_basis.shape[1]),
    )


def reference_forward(pair):
    p = pair["change_basis"] @ pair["psi_ft_block"]
    p = p.reshape(pair["size_b"], pair["size_c"], -1)
    return (p @ pair["w"])[None, :]


if __name__ == "__main__":
    key = jax.random.PRNGKey(0)
    pair_ids = [(lb, lc) for lb in range(3) for lc in range(3)]  # 9 irrep pairs
    keys = jax.random.split(key, len(pair_ids))

    pairs = [build_pair(lb, lc, L=4, key=k) for (lb, lc), k in zip(pair_ids, keys)]
    active = [p for p in pairs if p is not None]

    if active:
        # --- module init / param update (hoisted out of the forward path) ---
        w_packed, cb_t_packed, Kpad, Mpad = pack_fixed_buffers(active)
        block_t_packed = pack_psi_ft_blocks(active, Kpad)

        # --- forward: one pallas_call for all pairs ---
        out_rows = irreps_map_fourier_bl_batched(w_packed, block_t_packed, cb_t_packed)
        out_rows = jax.block_until_ready(out_rows)
    else:
        out_rows = None

    # Unpack per-pair results and verify against the reference semantics.
    # NOTE: the reshape assumes change_basis rows are ordered with j_cg fastest
    # (row-major (b, c) flattening), matching the synthetic basis above.
    # TODO(synk): verify this ordering against escnn's actual tensor-product basis.
    active_idx = 0
    for (lb, lc), pair in zip(pair_ids, pairs):
        size_b, size_c = 2 * lb + 1, 2 * lc + 1
        if pair is None:
            c_jj = jnp.zeros((1, size_b, size_c), dtype=jnp.float32)
            continue
        M = size_b * size_c
        c_jj = out_rows[active_idx, 0, :M].reshape(1, size_b, size_c)
        active_idx += 1

        ref = reference_forward(pair)
        assert c_jj.shape == (1, size_b, size_c), c_jj.shape
        err = float(jnp.max(jnp.abs(c_jj - ref)))
        assert jnp.allclose(c_jj, ref, atol=1e-5, rtol=1e-5), (lb, lc, err)
        # Padded tail of the row must be exactly zero (structural-zero check).
        assert float(jnp.max(jnp.abs(out_rows[active_idx - 1, 0, M:]))) == 0.0

    print("KERNEL_OK")
</pallas_src>

<mosaic_0001>
module attributes {stable_mosaic.version = 11 : i64} {
  func.func @_irreps_map_batched_kernel(%arg0: i32, %arg1: memref<1x1x32xf32, #tpu.memory_space<vmem>>, %arg2: memref<1x32x32xf32, #tpu.memory_space<vmem>>, %arg3: memref<1x32x128xf32, #tpu.memory_space<vmem>>, %arg4: memref<1x1x128xf32, #tpu.memory_space<vmem>>) attributes {dimension_semantics = [#tpu.dimension_semantics<parallel>], iteration_bounds = array<i64: 9>, scalar_prefetch = 0 : i64, scratch_operands = 0 : i64, tpu.core_type = #tpu.core_type<tc>, window_params = [{transform_indices = @transform_0, window_bounds = array<i64: 1, 1, 32>}, {transform_indices = @transform_1, window_bounds = array<i64: 1, 32, 32>}, {transform_indices = @transform_2, window_bounds = array<i64: 1, 32, 128>}, {transform_indices = @transform_3, window_bounds = array<i64: 1, 1, 128>}]} {
    %c0 = arith.constant 0 : index
    %c0_0 = arith.constant 0 : index
    %c0_1 = arith.constant 0 : index
    %0 = vector.load %arg1[%c0, %c0_0, %c0_1] : memref<1x1x32xf32, #tpu.memory_space<vmem>>, vector<1x1x32xf32>
    %1 = vector.shape_cast %0 : vector<1x1x32xf32> to vector<1x32xf32>
    %c0_2 = arith.constant 0 : index
    %c0_3 = arith.constant 0 : index
    %c0_4 = arith.constant 0 : index
    %2 = vector.load %arg2[%c0_2, %c0_3, %c0_4] : memref<1x32x32xf32, #tpu.memory_space<vmem>>, vector<1x32x32xf32>
    %3 = vector.shape_cast %2 : vector<1x32x32xf32> to vector<32x32xf32>
    %cst = arith.constant dense<0.000000e+00> : vector<1x32xf32>
    %4 = tpu.matmul %1, %3, %cst {dimension_numbers = #tpu.dot_dimension_numbers<[1], [0], [0], [1], [0, 0, 1, 1], [], []>} : vector<1x32xf32>, vector<32x32xf32>, vector<1x32xf32> -> vector<1x32xf32>
    %c0_5 = arith.constant 0 : index
    %c0_6 = arith.constant 0 : index
    %c0_7 = arith.constant 0 : index
    %5 = vector.load %arg3[%c0_5, %c0_6, %c0_7] : memref<1x32x128xf32, #tpu.memory_space<vmem>>, vector<1x32x128xf32>
    %6 = vector.shape_cast %5 : vector<1x32x128xf32> to vector<32x128xf32>
    %cst_8 = arith.constant dense<0.000000e+00> : vector<1x128xf32>
    %7 = tpu.matmul %4, %6, %cst_8 {dimension_numbers = #tpu.dot_dimension_numbers<[1], [0], [0], [1], [0, 0, 1, 1], [], []>} : vector<1x32xf32>, vector<32x128xf32>, vector<1x128xf32> -> vector<1x128xf32>
    %c0_9 = arith.constant 0 : index
    %c0_10 = arith.constant 0 : index
    %c0_11 = arith.constant 0 : index
    %8 = vector.load %arg4[%c0_9, %c0_10, %c0_11] : memref<1x1x128xf32, #tpu.memory_space<vmem>>, vector<1x1x128xf32>
    %9 = vector.shape_cast %8 : vector<1x1x128xf32> to vector<1x128xf32>
    %10 = vector.shape_cast %7 : vector<1x128xf32> to vector<1x1x128xf32>
    tpu.vector_store %arg4[%c0_9, %c0_10, %c0_11], %10 {strides = array<i32>} : memref<1x1x128xf32, #tpu.memory_space<vmem>>, vector<1x1x128xf32>,
    return
  }
  func.func @transform_0(%arg0: i32) -> (i32, i32, i32) {
    %c0_i32 = arith.constant 0 : i32
    %c0_i32_0 = arith.constant 0 : i32
    %c0_i32_1 = arith.constant 0 : i32
    return %arg0, %c0_i32, %c0_i32_0 : i32, i32, i32
  }
  func.func @transform_1(%arg0: i32) -> (i32, i32, i32) {
    %c0_i32 = arith.constant 0 : i32
    %c0_i32_0 = arith.constant 0 : i32
    %c0_i32_1 = arith.constant 0 : i32
    return %arg0, %c0_i32, %c0_i32_0 : i32, i32, i32
  }
  func.func @transform_2(%arg0: i32) -> (i32, i32, i32) {
    %c0_i32 = arith.constant 0 : i32
    %c0_i32_0 = arith.constant 0 : i32
    %c0_i32_1 = arith.constant 0 : i32
    return %arg0, %c0_i32, %c0_i32_0 : i32, i32, i32
  }
  func.func @transform_3(%arg0: i32) -> (i32, i32, i32) {
    %c0_i32 = arith.constant 0 : i32
    %c0_i32_0 = arith.constant 0 : i32
    %c0_i32_1 = arith.constant 0 : i32
    return %arg0, %c0_i32, %c0_i32_0 : i32, i32, i32
  }
}

</mosaic_0001>

<bundles_post_ra>
// kernel: tpu_custom_call.1
= control target key start
LH: loop header
LB: loop body
LE: loop exit
PB: predicated region body
PF: predicated region fallthrough
CT: control target
= control target key end

     0   :  { %s886_s0 = inlined_call_operand.hbm [shape: f32[9,1,32], index: 0, kind: input, shape index: {}]   ;;  %s887_s1 = inlined_call_operand.hbm [shape: f32[9,32,32], index: 1, kind: input, shape index: {}]   ;;  %s888_s2 = inlined_call_operand.hbm [shape: f32[9,32,128], index: 2, kind: input, shape index: {}]   ;;  %s889_s3 = inlined_call_operand.hbm [shape: f32[9,1,128], index: 3, kind: output, shape index: {}]  }
   0x1   :  { %892 = sst [smem:[#allocation12_spill]] %s887_s1 }
   0x2   :  { %8 = vsyncpa [#allocation3], 0 }
   0x3   :  { %10 = vsyncpa [#allocation3 + $0x1], 0 }
   0x4   :  { %11 = vsyncpa [#allocation6], 0 }
   0x5   :  { %13 = vsyncpa [#allocation6 + $0x1], 0 }
   0x6   :  { %14 = vsyncpa [#allocation4], 0 }
   0x7   :  { %16 = vsyncpa [#allocation4 + $0x1], 0  ;;  %s699_s12 = smov 0   ;;  %s701_s13 = smov 0  }
   0x8   :  { %s703_s14 = smov 0   ;;  %s705_s15 = smov 0  }
   0x9 LB: > { %s720_s16 = sadd.s32 4294967295, %s675_s15   ;;  %s439_s17 = sadd.s32 4294967294, %s675_s15   ;;  %s675_s15 = sphi %s705_s15, %s904_s15   ;;  %s671_s14 = sphi %s703_s14, %s903_s14   ;;  %s667_s13 = sphi %s701_s13, %s902_s13   ;;  %s663_s12 = sphi %s699_s12, %s901_s12  }
   0xa   : > { %s724_s18 = sadd.s32 1, %s675_s15   ;;  %s29_s19 = sadd.s32 1, %s671_s14 }
   0xb   : > { %s26_s20 = ssub.s32 %s675_s15, %s724_s18  ;;  %p36_p0 = scmp.ne.s32.totalorder %s671_s14, %s667_s13 }
   0xc   : > { %p27_p1 = scmp.eq.s32.totalorder %s26_s20, 0  ;;  %p37_p2 = scmp.eq.s32.totalorder %s675_s15, 0 }
   0xd   : > { %p42_p3 = scmp.ne.s32.totalorder %s667_s13, %s663_s12  ;;  %p43_p4 = scmp.eq.s32.totalorder %s720_s16, 0 }
   0xe   : > { %s736_s21 = scalar_select %p27_p1, %s671_s14, %s29_s19  }
   0xf   : > { %p38_p5 = por %p37_p2, %p36_p0  ;;  %p738_p6 = por %p43_p4, %p42_p3 }
  0x10   : > { %p118_p7 = scmp.eq.s32.totalorder %s720_s16, 8  ;;  %p124_p8 = scmp.eq.s32.totalorder %s439_s17, 8 }
  0x11   : > { %p479_p9 = scmp.lt.s32.totalorder %s675_s15, 9  ;;  %s753_s25 = sand.u32 1, %s671_s14  }
  0x12   : > { %p744_p10 = por %p118_p7, %p36_p0  ;;  %p748_p11 = por %p124_p8, %p42_p3 }
  0x13   : > { %p755_p12 = pnand %p479_p9, %p38_p5  ;;  %s161_s27 = sand.u32 1, %s675_s15  }
  0x14   : > { %s442_s28 = sshll.u32 %s753_s25, 5  ;;  %s455_s29 = sshll.u32 %s675_s15, 5 }
  0x15   : > { %s897_s1 = sld [smem:[#allocation12_spill]]  ;;  %s165_s6 = scalar_lea.vmem [#allocation5], %s442_s28 }
  0x16   : > { %s173_s7 = sshll.u32 %s165_s6, 4  ;;  %s767_s9 = scalar_lea.sflag [#allocation6], %s161_s27  ;;  %s174_s7 = int_to_ptr.vmem [resolvable:$true] %s173_s7 }
  0x17   : > { %p519_p0 = pneg %p755_p12 }
  0x1b   : > { %s170_s5 = scalar_lea.hbm %s897_s1, %s455_s29  ;;  %s522_s20 = scalar_lea.hbm %s897_s1, 288 }
  0x1c   : > { %s171_s8 = sshll.u32 %s170_s5, 4  ;;  %s172_s8 = int_to_ptr.hbm [resolvable:$true] %s171_s8 }
  0x1d   : > { %s515_s10 = sshra.s32 %s172_s8, 4  ;;  %s516_s10 = int_to_ptr.hbm [resolvable:$true] %s515_s10 }
  0x1e   : > { %s517_s11 = scalar_lea.hbm %s516_s10, 32  ;;  %p523_p3 = scmp.lt.s32.totalorder %s516_s10, %s897_s1 }
  0x1f   : > { %p518_p13 = scmp.ne.s32.totalorder %s516_s10, %s517_s11  ;;  %p524_p4 = scmp.lt.s32.totalorder %s522_s20, %s517_s11 }
  0x21   : > { %p520_p1 = pnand %p519_p0, %p518_p13  ;;  %p525_p5 = por %p524_p4, %p523_p3 }
  0x23   : > { %p521_p2 = pneg %p520_p1 }
  0x25   : > { %p526_p7 = pnand %p525_p5, %p521_p2 }
  0x27   : > { %529 = shalt.err (!%p526_p7)
}
  0x28   : > { %s890_s27 = smov 128   ;;  %s891_s5 = smov 8  }
  0x29   : > { %471 = dma.hbm_to_vmem [thread:$0]  (!%p755_p12), %s172_s8, 512, %s174_s7, %s767_s9, %s890_s27, %s890_s27, %s891_s5  }
  0x2a   : > { %s192_s11 = scalar_lea.hbm %s888_s2, %s455_s29  ;;  %s187_s17 = scalar_lea.vmem [#allocation7], %s442_s28 }
  0x2b   : > { %s195_s19 = sshll.u32 %s187_s17, 4  ;;  %s193_s20 = sshll.u32 %s192_s11, 4  ;;  %s791_s19 = int_to_ptr.vmem [resolvable:$true] %s195_s19  ;;  %s793_s20 = int_to_ptr.hbm [resolvable:$true] %s193_s20 }
  0x2c   : > { %p448_p8 = scmp.ge.s32.totalorder %s675_s15, 1  ;;  %p203_p9 = scmp.lt.s32.totalorder %s675_s15, 10 }
  0x2d   : > { %s150_s7 = scalar_lea.hbm %s886_s0, %s675_s15  ;;  %s147_s28 = scalar_lea.vmem [#allocation2], %s753_s25 }
  0x2e   : > { %p801_p13 = pnand %p448_p8, %p203_p9  ;;  %s152_s29 = sshll.u32 %s150_s7, 4  ;;  %s153_s29 = int_to_ptr.hbm [resolvable:$true] %s152_s29 }
  0x2f   : > { %s154_s6 = sshll.u32 %s147_s28, 4  ;;  %s145_s10 = scalar_lea.sflag [#allocation3], %s753_s25  ;;  %s155_s6 = int_to_ptr.vmem [resolvable:$true] %s154_s6 }
  0x30   : > { %s545_s11 = sshra.s32 %s153_s29, 4  ;;  %s552_s27 = scalar_lea.hbm %s886_s0, 9  ;;  %s546_s11 = int_to_ptr.hbm [resolvable:$true] %s545_s11 }
  0x31   : > { %s547_s17 = scalar_lea.hbm %s546_s11, 1  ;;  %p553_p4 = scmp.lt.s32.totalorder %s546_s11, %s886_s0 }
  0x32   : > { %p548_p1 = scmp.ne.s32.totalorder %s546_s11, %s547_s17  ;;  %p554_p5 = scmp.lt.s32.totalorder %s552_s27, %s547_s17 }
  0x34   : > { %p550_p2 = pnand %p548_p1, %p519_p0  ;;  %p555_p7 = por %p554_p5, %p553_p4 }
  0x36   : > { %p551_p3 = pneg %p550_p2 }
  0x38   : > { %p556_p8 = pnand %p555_p7, %p551_p3 }
  0x3a   : > { %559 = shalt.err (!%p556_p8)
}
  0x3b   : > { %468 = dma.hbm_to_vmem [thread:$0]  (!%p755_p12), %s153_s29, 16, %s155_s6, %s145_s10  }
  0x3c   : > { %s575_s25 = sshra.s32 %s793_s20, 4  ;;  %s582_s27 = scalar_lea.hbm %s888_s2, 288  ;;  %s576_s25 = int_to_ptr.hbm [resolvable:$true] %s575_s25 }
  0x3d   : > { %s577_s7 = scalar_lea.hbm %s576_s25, 32  ;;  %p583_p3 = scmp.lt.s32.totalorder %s576_s25, %s888_s2 }
  0x3e   : > { %p578_p9 = scmp.ne.s32.totalorder %s576_s25, %s577_s7  ;;  %p584_p4 = scmp.lt.s32.totalorder %s582_s27, %s577_s7 }
  0x40   : > { %p580_p1 = pnand %p578_p9, %p519_p0  ;;  %p585_p5 = por %p584_p4, %p583_p3 }
  0x42   : > { %p581_p2 = pneg %p580_p1 }
  0x44   : > { %p586_p7 = pnand %p585_p5, %p581_p2 }
  0x46   : > { %589 = shalt.err (!%p586_p7)
}
  0x47   : > { %s899_s29 = smov 8   ;;  %s900_s6 = smov 128  }
  0x48   : > { %474 = dma.hbm_to_vmem [thread:$0]  (!%p755_p12), %s793_s20, 512, %s791_s19, %s767_s9, %s900_s6, %s900_s6, %s899_s29  }
  0x49   : > { %207 = sbr.rel (%p801_p13) target bundleno = 345 (0x159), region = 32  ;;  %s839_s10 = sand.u32 (!%p801_p13), 1, %s667_s13  }
  0x4a   : > { %s210_s17 = scalar_lea.sflag (!%p801_p13), [#allocation3], %s839_s10  ;;  %s212_s30 = scalar_lea.vmem (!%p801_p13), [#allocation2], %s839_s10 }
  0x4e   : > { %650 = dma.done.wait (%p738_p6), %s210_s17, 16  }
  0x4f   : > { %652 = vsyncadd (%p738_p6), %s210_s17, 4294967280  ;;  %s218_s26 = sand.u32 1, %s720_s16   ;;  %s449_s9 = sshll.u32 %s839_s10, 5 }
  0x50   : > { %s219_s19 = scalar_lea.sflag [#allocation6], %s218_s26  ;;  %s222_s20 = scalar_lea.vmem [#allocation5], %s449_s9 }
  0x51   : > { %654 = dma.done.wait (%p738_p6), %s219_s19, 1024  }
  0x52   : > { %656 = vsyncadd (%p738_p6), %s219_s19, 4294966272  ;;  %v268_v0 = vld [vmem:[%s222_s20 + $0x18] sm:$0xff]  ;;  %v267_v1 = vld [vmem:[%s222_s20 + $0x10] sm:$0xff]  ;;  %s232_s8 = scalar_lea.vmem [#allocation7], %s449_s9  ;;  %vm269_vm0 = vcmask 261120   ;;  %s330_s25 = scalar_lea.hbm %s889_s3, %s720_s16 }
  0x53   : > { %285 = vmatpush.msra.mxu0 %v268_v0  ;;  %v296_v2 = vld [vmem:[%s232_s8 + $0x18] sm:$0xff]  ;;  %v266_v3 = vld [vmem:[%s222_s20 + $0x8] sm:$0xff]  ;;  %v295_v4 = vld [vmem:[%s232_s8 + $0x10] sm:$0xff]  ;;  %s263_s7 = scalar_lea.vmem [#allocation8], %s839_s10  ;;  %s334_s1 = sshll.u32 %s330_s25, 4  ;;  %s335_s1 = int_to_ptr.hbm [resolvable:$true] %s334_s1 }
  0x54   : > { %312 = vmatpush.msra.mxu1 %v296_v2  ;;  %v294_v5 = vld [vmem:[%s232_s8 + $0x8] sm:$0xff]  ;;  %v265_v6 = vld [vmem:[%s222_s20] sm:$0xff]  ;;  %v264_v7 = vld [vmem:[%s212_s30] sm:$0x1]  ;;  %s332_s28 = sshll.u32 %s263_s7, 4  ;;  %s322_s27 = scalar_lea.sflag [#allocation4], %s839_s10  ;;  %s333_s28 = int_to_ptr.vmem [resolvable:$true] %s332_s28 }
  0x55   : > { %286 = vmatpush.msra.mxu0 %v267_v1  ;;  %v293_v8 = vld [vmem:[%s232_s8] sm:$0xff]  ;;  %s619_s5 = sshra.s32 %s335_s1, 4  ;;  %s625_s17 = scalar_lea.hbm %s889_s3, 9  ;;  %s620_s5 = int_to_ptr.hbm [resolvable:$true] %s619_s5 }
  0x56   : > { %313 = vmatpush.msra.mxu1 %v295_v4  ;;  %s621_s11 = scalar_lea.hbm %s620_s5, 1  ;;  %p626_p13 = scmp.lt.s32.totalorder %s620_s5, %s889_s3 }
  0x57   : > { %287 = vmatpush.msra.mxu0 %v266_v3  ;;  %p622_p6 = scmp.ne.s32.totalorder %s620_s5, %s621_s11  ;;  %p627_p8 = scmp.lt.s32.totalorder %s625_s17, %s621_s11 }
  0x58   : > { %314 = vmatpush.msra.mxu1 %v294_v5 }
  0x59   : > { %288 = vmatpush.msra.mxu0 %v265_v6  ;;  %p623_p12 = pnand %p622_p6, %p744_p10  ;;  %p628_p9 = por %p627_p8, %p626_p13 }
  0x5a   : > { %451 = vmatmul.msk.f32.vlgmr.msra.gmra.mxu0 %vm269_vm0, %v264_v7  ;;  %315 = vmatpush.msra.mxu1 %v293_v8 }
  0x5b   : > { %p624_p0 = pneg %p623_p12 }
  0x5d   : > { %p629_p1 = pnand %p628_p9, %p624_p0 }
  0xd7   : > { %v290_v9 = vpop.f32.mrf.mxu0 }
  0xd8   : > { %452 = vmatmul.msk.f32.vlgmr.msra.gmra.mxu1 %vm269_vm0, %v290_v9 }
 0x155   : > { %v317_v10 = vpop.f32.mrf.mxu1 }
 0x156   : > { %320 = vst [vmem:[%s263_s7] sm:$0x1] %v317_v10 }
 0x157   : > { %632 = shalt.err (!%p629_p1)
}
 0x158   : > { %463 = dma.vmem_to_hbm [thread:$0]  (%p744_p10), %s333_s28, 16, %s335_s1, %s322_s27  }
 0x159 PF: > { %p480_p2 = scmp.ge.s32.totalorder %s675_s15, 2  ;;  %s346_s10 = sand.u32 1, %s663_s12  }
 0x15a   : > { %s347_s26 = scalar_lea.sflag [#allocation4], %s346_s10 }
 0x15b   : > { %p476_p3 = pnand %p480_p2, %p748_p11 }
 0x15d   : > { %p477_p4 = pneg %p476_p3 }
 0x15f   : > { %658 = dma.done.wait (%p477_p4), %s347_s26, 16  }
 0x160   : > { %660 = vsyncadd (%p477_p4), %s347_s26, 4294967280  ;;  %p19_p5 = scmp.ge.s32.totalorder %s724_s18, 11   ;;  %s901_s12 = smov %s667_s13 }
 0x161   : > { %s902_s13 = smov %s671_s14  ;;  %s903_s14 = smov %s736_s21 }
 0x162   : > { %s904_s15 = smov %s724_s18  ;;  %21 = sbr.rel (!%p19_p5) target bundleno = 9 (0x9), region = 101 }
 0x167   :  { %352 = vsyncpa [#allocation3], 1 }
 0x168   :  { %354 = vsyncpa [#allocation3 + $0x1], 1 }
 0x169   :  { %355 = vsyncpa [#allocation6], 1 }
 0x16a   :  { %357 = vsyncpa [#allocation6 + $0x1], 1 }
 0x16b   :  { %358 = vsyncpa [#allocation4], 1 }
 0x16c   :  { %360 = vsyncpa [#allocation4 + $0x1], 1 }

</bundles_post_ra>
